<compile_context>
chip_gen: v7x
topology: tpu7x:2x2x1
jax: 0.10.0
libtpu: 0.0.40
codegen_flags: <defaults>
</compile_context>

<pallas_src>
import functools
import math

import jax
import jax.numpy as jnp
from jax import lax
from jax.experimental import pallas as pl
from jax.experimental.pallas import tpu as pltpu


def _round_up(x, m):
    return ((x + m - 1) // m) * m


def _fullmodel_kernel(e1_ref, e2_ref,
                      w1a_ref, w1b_ref, b1_ref,
                      w2_ref, b2_ref,
                      w3_ref, b3_ref,
                      w4_ref, b4_ref,
                      out_ref,
                      acc1_ref, acc2_ref,
                      *, inv_len, seq_len, tile_l, mask_l):
    l = pl.program_id(1)

    @pl.when(l == 0)
    def _():
        acc1_ref[...] = jnp.zeros_like(acc1_ref)
        acc2_ref[...] = jnp.zeros_like(acc2_ref)

    # Accumulate raw sums over the sequence (L) axis in float32
    # (works for f32 or bf16 activation streams).
    x1 = e1_ref[...].astype(jnp.float32)
    x2 = e2_ref[...].astype(jnp.float32)

    if mask_l:
        # Ragged last L-tile: zero out-of-range positions via select (no padding
        # copy in HBM; stale/garbage OOB values never propagate, select != mul).
        pos = l * tile_l + lax.broadcasted_iota(jnp.int32, (1, tile_l, 1), 1)
        valid = pos < seq_len
        x1 = jnp.where(valid, x1, 0.0)
        x2 = jnp.where(valid, x2, 0.0)

    acc1_ref[...] += jnp.sum(x1, axis=1)
    acc2_ref[...] += jnp.sum(x2, axis=1)

    # Tiny MLP epilogue only on the final L step of this batch tile.
    @pl.when(l == pl.num_programs(1) - 1)
    def _():
        s1 = acc1_ref[...] * inv_len          # mean over the TRUE sequence length
        s2 = acc2_ref[...] * inv_len
        # concat([s1, s2], axis=1) @ W1  ==  s1 @ W1[:D] + s2 @ W1[D:]
        h = (jnp.dot(s1, w1a_ref[...], preferred_element_type=jnp.float32)
             + jnp.dot(s2, w1b_ref[...], preferred_element_type=jnp.float32)
             + b1_ref[...])
        h = jnp.maximum(h, 0.0)
        h = jnp.dot(h, w2_ref[...], preferred_element_type=jnp.float32) + b2_ref[...]
        h = jnp.maximum(h, 0.0)
        h = jnp.dot(h, w3_ref[...], preferred_element_type=jnp.float32) + b3_ref[...]
        h = jnp.maximum(h, 0.0)
        out = jnp.dot(h, w4_ref[...], preferred_element_type=jnp.float32) + b4_ref[...]
        out_ref[...] = out.astype(out_ref.dtype)


def full_model_forward(e1, e2, params, *, vmem_budget_bytes=24 * 1024 * 1024):
    """e1, e2: (B, L, D) last_hidden_state tensors (float32 or bfloat16)."""
    B, L, D = e1.shape
    assert e2.shape == (B, L, D)
    (w1, b1, w2, b2, w3, b3, w4, b4) = params
    assert w1.shape[0] == 2 * D

    # Split W1 row-wise so the concat can be eliminated in-kernel.
    w1a, w1b = w1[:D], w1[D:]

    elem_bytes = jnp.dtype(e1.dtype).itemsize

    # --- tile selection: 2 inputs x 2 pipeline buffers must fit the VMEM budget ---
    TB = min(B, 8)
    max_tl = max(8, vmem_budget_bytes // (4 * TB * D * elem_bytes))
    tl_cap = max(8, min(512, (max_tl // 8) * 8))
    if L <= tl_cap:
        TL = L            # single L step; full-dim block is always layout-legal
    else:
        TL = tl_cap       # multiple of 8; ragged tail handled in-kernel

    nb = pl.cdiv(B, TB)
    nl = pl.cdiv(L, TL)
    Bp = nb * TB          # only the tiny (Bp, 1) OUTPUT is padded; inputs are not
    mask_l = (L % TL) != 0

    kernel = functools.partial(_fullmodel_kernel,
                               inv_len=1.0 / L, seq_len=L, tile_l=TL, mask_l=mask_l)

    e_spec = pl.BlockSpec((TB, TL, D), lambda b, l: (b, l, 0))

    def const_spec(shape):
        # Constant index map -> fetched once, VMEM-resident across all grid steps.
        return pl.BlockSpec(shape, lambda b, l, _n=len(shape): (0,) * _n)

    out = pl.pallas_call(
        kernel,
        out_shape=jax.ShapeDtypeStruct((Bp, 1), jnp.float32),
        grid_spec=pltpu.PrefetchScalarGridSpec(
            num_scalar_prefetch=0,
            grid=(nb, nl),
            in_specs=[
                e_spec, e_spec,
                const_spec(w1a.shape), const_spec(w1b.shape), const_spec(b1.shape),
                const_spec(w2.shape), const_spec(b2.shape),
                const_spec(w3.shape), const_spec(b3.shape),
                const_spec(w4.shape), const_spec(b4.shape),
            ],
            out_specs=pl.BlockSpec((TB, 1), lambda b, l: (b, 0)),
            scratch_shapes=[pltpu.VMEM((TB, D), jnp.float32),
                            pltpu.VMEM((TB, D), jnp.float32)],
        ),
        compiler_params=pltpu.CompilerParams(
            dimension_semantics=("parallel", "arbitrary"),
            vmem_limit_bytes=48 * 1024 * 1024,
        ),
    )(e1, e2, w1a, w1b, b1, w2, b2, w3, b3, w4, b4)

    return out[:B]


def init_linear(key, fan_in, fan_out):
    """Deterministic PyTorch-style uniform(-1/sqrt(fan_in), 1/sqrt(fan_in)) init."""
    kw, kb = jax.random.split(key)
    bound = 1.0 / math.sqrt(fan_in)
    w = jax.random.uniform(kw, (fan_in, fan_out), jnp.float32, -bound, bound)
    b = jax.random.uniform(kb, (1, fan_out), jnp.float32, -bound, bound)
    return w, b


def make_params(key, input_size):
    k1, k2, k3, k4 = jax.random.split(key, 4)
    w1, b1 = init_linear(k1, input_size, 512)
    w2, b2 = init_linear(k2, 512, 128)
    w3, b3 = init_linear(k3, 128, 64)
    w4, b4 = init_linear(k4, 64, 1)
    return (w1, b1, w2, b2, w3, b3, w4, b4)


def reference_forward(e1, e2, params):
    (w1, b1, w2, b2, w3, b3, w4, b4) = params
    s1 = jnp.mean(e1, axis=1)
    s2 = jnp.mean(e2, axis=1)
    x = jnp.concatenate([s1, s2], axis=1)
    h = jnp.maximum(x @ w1 + b1, 0.0)
    h = jnp.maximum(h @ w2 + b2, 0.0)
    h = jnp.maximum(h @ w3 + b3, 0.0)
    return h @ w4 + b4


if __name__ == "__main__":
    # Small synthetic shapes: batch=2, seq=8, hidden=32 -> input_size = 64.
    B, L, D = 2, 8, 32
    input_size = 2 * D

    key = jax.random.PRNGKey(0)
    k_e1, k_e2, k_p = jax.random.split(key, 3)
    e1 = jax.random.normal(k_e1, (B, L, D), jnp.float32)  # rna_fm(tokens1).last_hidden_state
    e2 = jax.random.normal(k_e2, (B, L, D), jnp.float32)  # rna_fm(tokens2).last_hidden_state
    params = make_params(k_p, input_size)

    out = full_model_forward(e1, e2, params)
    out = jax.block_until_ready(out)

    ref = reference_forward(e1, e2, params)
    assert out.shape == (B, 1)
    assert jnp.allclose(out, ref, atol=1e-5, rtol=1e-5)

    print("KERNEL_OK")
</pallas_src>

<mosaic_0001>
module attributes {stable_mosaic.version = 11 : i64} {
  func.func @_fullmodel_kernel(%arg0: i32, %arg1: i32, %arg2: memref<2x8x32xf32, #tpu.memory_space<vmem>>, %arg3: memref<2x8x32xf32, #tpu.memory_space<vmem>>, %arg4: memref<32x512xf32, #tpu.memory_space<vmem>>, %arg5: memref<32x512xf32, #tpu.memory_space<vmem>>, %arg6: memref<1x512xf32, #tpu.memory_space<vmem>>, %arg7: memref<512x128xf32, #tpu.memory_space<vmem>>, %arg8: memref<1x128xf32, #tpu.memory_space<vmem>>, %arg9: memref<128x64xf32, #tpu.memory_space<vmem>>, %arg10: memref<1x64xf32, #tpu.memory_space<vmem>>, %arg11: memref<64x1xf32, #tpu.memory_space<vmem>>, %arg12: memref<1x1xf32, #tpu.memory_space<vmem>>, %arg13: memref<2x1xf32, #tpu.memory_space<vmem>>, %arg14: memref<2x32xf32, #tpu.memory_space<vmem>>, %arg15: memref<2x32xf32, #tpu.memory_space<vmem>>) attributes {dimension_semantics = [#tpu.dimension_semantics<parallel>, #tpu.dimension_semantics<arbitrary>], iteration_bounds = array<i64: 1, 1>, scalar_prefetch = 0 : i64, scratch_operands = 2 : i64, tpu.core_type = #tpu.core_type<tc>, window_params = [{transform_indices = @transform_0, window_bounds = array<i64: 2, 8, 32>}, {transform_indices = @transform_1, window_bounds = array<i64: 2, 8, 32>}, {pipeline_mode = #tpu.pipeline_mode<synchronous>, transform_indices = @transform_2, window_bounds = array<i64: 32, 512>}, {pipeline_mode = #tpu.pipeline_mode<synchronous>, transform_indices = @transform_3, window_bounds = array<i64: 32, 512>}, {pipeline_mode = #tpu.pipeline_mode<synchronous>, transform_indices = @transform_4, window_bounds = array<i64: 1, 512>}, {pipeline_mode = #tpu.pipeline_mode<synchronous>, transform_indices = @transform_5, window_bounds = array<i64: 512, 128>}, {pipeline_mode = #tpu.pipeline_mode<synchronous>, transform_indices = @transform_6, window_bounds = array<i64: 1, 128>}, {pipeline_mode = #tpu.pipeline_mode<synchronous>, transform_indices = @transform_7, window_bounds = array<i64: 128, 64>}, {pipeline_mode = #tpu.pipeline_mode<synchronous>, transform_indices = @transform_8, window_bounds = array<i64: 1, 64>}, {pipeline_mode = #tpu.pipeline_mode<synchronous>, transform_indices = @transform_9, window_bounds = array<i64: 64, 1>}, {pipeline_mode = #tpu.pipeline_mode<synchronous>, transform_indices = @transform_10, window_bounds = array<i64: 1, 1>}, {transform_indices = @transform_11, window_bounds = array<i64: 2, 1>}]} {
    %c0_i32 = arith.constant 0 : i32
    %0 = arith.cmpi eq, %arg1, %c0_i32 : i32
    %1 = arith.extui %0 : i1 to i32
    %c0_i32_0 = arith.constant 0 : i32
    %2 = arith.cmpi ne, %1, %c0_i32_0 : i32
    scf.if %2 {
      %cst_17 = arith.constant 0.000000e+00 : f32
      %16 = vector.broadcast %cst_17 : f32 to vector<2x32xf32>
      %c0_18 = arith.constant 0 : index
      %c0_19 = arith.constant 0 : index
      %17 = vector.load %arg14[%c0_18, %c0_19] : memref<2x32xf32, #tpu.memory_space<vmem>>, vector<2x32xf32>
      tpu.vector_store %arg14[%c0_18, %c0_19], %16 {strides = array<i32>} : memref<2x32xf32, #tpu.memory_space<vmem>>, vector<2x32xf32>,
      %cst_20 = arith.constant 0.000000e+00 : f32
      %18 = vector.broadcast %cst_20 : f32 to vector<2x32xf32>
      %c0_21 = arith.constant 0 : index
      %c0_22 = arith.constant 0 : index
      %19 = vector.load %arg15[%c0_21, %c0_22] : memref<2x32xf32, #tpu.memory_space<vmem>>, vector<2x32xf32>
      tpu.vector_store %arg15[%c0_21, %c0_22], %18 {strides = array<i32>} : memref<2x32xf32, #tpu.memory_space<vmem>>, vector<2x32xf32>,
    } else {
    }
    %c0 = arith.constant 0 : index
    %c0_1 = arith.constant 0 : index
    %c0_2 = arith.constant 0 : index
    %3 = vector.load %arg2[%c0, %c0_1, %c0_2] : memref<2x8x32xf32, #tpu.memory_space<vmem>>, vector<2x8x32xf32>
    %c0_3 = arith.constant 0 : index
    %c0_4 = arith.constant 0 : index
    %c0_5 = arith.constant 0 : index
    %4 = vector.load %arg3[%c0_3, %c0_4, %c0_5] : memref<2x8x32xf32, #tpu.memory_space<vmem>>, vector<2x8x32xf32>
    %c0_6 = arith.constant 0 : index
    %c0_7 = arith.constant 0 : index
    %5 = vector.load %arg14[%c0_6, %c0_7] : memref<2x32xf32, #tpu.memory_space<vmem>>, vector<2x32xf32>
    %cst = arith.constant dense<0.000000e+00> : vector<2x32xf32>
    %6 = vector.multi_reduction <add>, %3, %cst [1] : vector<2x8x32xf32> to vector<2x32xf32>
    %7 = arith.addf %5, %6 : vector<2x32xf32>
    %c0_8 = arith.constant 0 : index
    %c0_9 = arith.constant 0 : index
    %8 = vector.load %arg14[%c0_8, %c0_9] : memref<2x32xf32, #tpu.memory_space<vmem>>, vector<2x32xf32>
    tpu.vector_store %arg14[%c0_8, %c0_9], %7 {strides = array<i32>} : memref<2x32xf32, #tpu.memory_space<vmem>>, vector<2x32xf32>,
    %c0_10 = arith.constant 0 : index
    %c0_11 = arith.constant 0 : index
    %9 = vector.load %arg15[%c0_10, %c0_11] : memref<2x32xf32, #tpu.memory_space<vmem>>, vector<2x32xf32>
    %cst_12 = arith.constant dense<0.000000e+00> : vector<2x32xf32>
    %10 = vector.multi_reduction <add>, %4, %cst_12 [1] : vector<2x8x32xf32> to vector<2x32xf32>
    %11 = arith.addf %9, %10 : vector<2x32xf32>
    %c0_13 = arith.constant 0 : index
    %c0_14 = arith.constant 0 : index
    %12 = vector.load %arg15[%c0_13, %c0_14] : memref<2x32xf32, #tpu.memory_space<vmem>>, vector<2x32xf32>
    tpu.vector_store %arg15[%c0_13, %c0_14], %11 {strides = array<i32>} : memref<2x32xf32, #tpu.memory_space<vmem>>, vector<2x32xf32>,
    %c0_i32_15 = arith.constant 0 : i32
    %13 = arith.cmpi eq, %arg1, %c0_i32_15 : i32
    %14 = arith.extui %13 : i1 to i32
    %c0_i32_16 = arith.constant 0 : i32
    %15 = arith.cmpi ne, %14, %c0_i32_16 : i32
    scf.if %15 {
      %c0_17 = arith.constant 0 : index
      %c0_18 = arith.constant 0 : index
      %16 = vector.load %arg14[%c0_17, %c0_18] : memref<2x32xf32, #tpu.memory_space<vmem>>, vector<2x32xf32>
      %cst_19 = arith.constant 1.250000e-01 : f32
      %17 = vector.broadcast %cst_19 : f32 to vector<2x32xf32>
      %18 = arith.mulf %16, %17 : vector<2x32xf32>
      %c0_20 = arith.constant 0 : index
      %c0_21 = arith.constant 0 : index
      %19 = vector.load %arg15[%c0_20, %c0_21] : memref<2x32xf32, #tpu.memory_space<vmem>>, vector<2x32xf32>
      %cst_22 = arith.constant 1.250000e-01 : f32
      %20 = vector.broadcast %cst_22 : f32 to vector<2x32xf32>
      %21 = arith.mulf %19, %20 : vector<2x32xf32>
      %c0_23 = arith.constant 0 : index
      %c0_24 = arith.constant 0 : index
      %22 = vector.load %arg4[%c0_23, %c0_24] : memref<32x512xf32, #tpu.memory_space<vmem>>, vector<32x512xf32>
      %cst_25 = arith.constant dense<0.000000e+00> : vector<2x512xf32>
      %23 = tpu.matmul %18, %22, %cst_25 {dimension_numbers = #tpu.dot_dimension_numbers<[1], [0], [0], [1], [0, 0, 1, 1], [], []>} : vector<2x32xf32>, vector<32x512xf32>, vector<2x512xf32> -> vector<2x512xf32>
      %c0_26 = arith.constant 0 : index
      %c0_27 = arith.constant 0 : index
      %24 = vector.load %arg5[%c0_26, %c0_27] : memref<32x512xf32, #tpu.memory_space<vmem>>, vector<32x512xf32>
      %cst_28 = arith.constant dense<0.000000e+00> : vector<2x512xf32>
      %25 = tpu.matmul %21, %24, %cst_28 {dimension_numbers = #tpu.dot_dimension_numbers<[1], [0], [0], [1], [0, 0, 1, 1], [], []>} : vector<2x32xf32>, vector<32x512xf32>, vector<2x512xf32> -> vector<2x512xf32>
      %26 = arith.addf %23, %25 : vector<2x512xf32>
      %c0_29 = arith.constant 0 : index
      %c0_30 = arith.constant 0 : index
      %27 = vector.load %arg6[%c0_29, %c0_30] : memref<1x512xf32, #tpu.memory_space<vmem>>, vector<1x512xf32>
      %28 = vector.broadcast %27 : vector<1x512xf32> to vector<2x512xf32>
      %29 = arith.addf %26, %28 : vector<2x512xf32>
      %cst_31 = arith.constant 0.000000e+00 : f32
      %30 = vector.broadcast %cst_31 : f32 to vector<2x512xf32>
      %31 = arith.maximumf %29, %30 : vector<2x512xf32>
      %c0_32 = arith.constant 0 : index
      %c0_33 = arith.constant 0 : index
      %32 = vector.load %arg7[%c0_32, %c0_33] : memref<512x128xf32, #tpu.memory_space<vmem>>, vector<512x128xf32>
      %cst_34 = arith.constant dense<0.000000e+00> : vector<2x128xf32>
      %33 = tpu.matmul %31, %32, %cst_34 {dimension_numbers = #tpu.dot_dimension_numbers<[1], [0], [0], [1], [0, 0, 1, 1], [], []>} : vector<2x512xf32>, vector<512x128xf32>, vector<2x128xf32> -> vector<2x128xf32>
      %c0_35 = arith.constant 0 : index
      %c0_36 = arith.constant 0 : index
      %34 = vector.load %arg8[%c0_35, %c0_36] : memref<1x128xf32, #tpu.memory_space<vmem>>, vector<1x128xf32>
      %35 = vector.broadcast %34 : vector<1x128xf32> to vector<2x128xf32>
      %36 = arith.addf %33, %35 : vector<2x128xf32>
      %cst_37 = arith.constant 0.000000e+00 : f32
      %37 = vector.broadcast %cst_37 : f32 to vector<2x128xf32>
      %38 = arith.maximumf %36, %37 : vector<2x128xf32>
      %c0_38 = arith.constant 0 : index
      %c0_39 = arith.constant 0 : index
      %39 = vector.load %arg9[%c0_38, %c0_39] : memref<128x64xf32, #tpu.memory_space<vmem>>, vector<128x64xf32>
      %cst_40 = arith.constant dense<0.000000e+00> : vector<2x64xf32>
      %40 = tpu.matmul %38, %39, %cst_40 {dimension_numbers = #tpu.dot_dimension_numbers<[1], [0], [0], [1], [0, 0, 1, 1], [], []>} : vector<2x128xf32>, vector<128x64xf32>, vector<2x64xf32> -> vector<2x64xf32>
      %c0_41 = arith.constant 0 : index
      %c0_42 = arith.constant 0 : index
      %41 = vector.load %arg10[%c0_41, %c0_42] : memref<1x64xf32, #tpu.memory_space<vmem>>, vector<1x64xf32>
      %42 = vector.broadcast %41 : vector<1x64xf32> to vector<2x64xf32>
      %43 = arith.addf %40, %42 : vector<2x64xf32>
      %cst_43 = arith.constant 0.000000e+00 : f32
      %44 = vector.broadcast %cst_43 : f32 to vector<2x64xf32>
      %45 = arith.maximumf %43, %44 : vector<2x64xf32>
      %c0_44 = arith.constant 0 : index
      %c0_45 = arith.constant 0 : index
      %46 = vector.load %arg11[%c0_44, %c0_45] : memref<64x1xf32, #tpu.memory_space<vmem>>, vector<64x1xf32>
      %cst_46 = arith.constant dense<0.000000e+00> : vector<2x1xf32>
      %47 = tpu.matmul %45, %46, %cst_46 {dimension_numbers = #tpu.dot_dimension_numbers<[1], [0], [0], [1], [0, 0, 1, 1], [], []>} : vector<2x64xf32>, vector<64x1xf32>, vector<2x1xf32> -> vector<2x1xf32>
      %c0_47 = arith.constant 0 : index
      %c0_48 = arith.constant 0 : index
      %48 = vector.load %arg12[%c0_47, %c0_48] : memref<1x1xf32, #tpu.memory_space<vmem>>, vector<1x1xf32>
      %49 = vector.broadcast %48 : vector<1x1xf32> to vector<2x1xf32>
      %50 = arith.addf %47, %49 : vector<2x1xf32>
      %c0_49 = arith.constant 0 : index
      %c0_50 = arith.constant 0 : index
      %51 = vector.load %arg13[%c0_49, %c0_50] : memref<2x1xf32, #tpu.memory_space<vmem>>, vector<2x1xf32>
      tpu.vector_store %arg13[%c0_49, %c0_50], %50 {strides = array<i32>} : memref<2x1xf32, #tpu.memory_space<vmem>>, vector<2x1xf32>,
    } else {
    }
    return
  }
  func.func @transform_0(%arg0: i32, %arg1: i32) -> (i32, i32, i32) {
    %c0_i32 = arith.constant 0 : i32
    %c0_i32_0 = arith.constant 0 : i32
    return %arg0, %arg1, %c0_i32 : i32, i32, i32
  }
  func.func @transform_1(%arg0: i32, %arg1: i32) -> (i32, i32, i32) {
    %c0_i32 = arith.constant 0 : i32
    %c0_i32_0 = arith.constant 0 : i32
    return %arg0, %arg1, %c0_i32 : i32, i32, i32
  }
  func.func @transform_2(%arg0: i32, %arg1: i32) -> (i32, i32) {
    %c0_i32 = arith.constant 0 : i32
    %c0_i32_0 = arith.constant 0 : i32
    %c0_i32_1 = arith.constant 0 : i32
    return %c0_i32, %c0_i32_0 : i32, i32
  }
  func.func @transform_3(%arg0: i32, %arg1: i32) -> (i32, i32) {
    %c0_i32 = arith.constant 0 : i32
    %c0_i32_0 = arith.constant 0 : i32
    %c0_i32_1 = arith.constant 0 : i32
    return %c0_i32, %c0_i32_0 : i32, i32
  }
  func.func @transform_4(%arg0: i32, %arg1: i32) -> (i32, i32) {
    %c0_i32 = arith.constant 0 : i32
    %c0_i32_0 = arith.constant 0 : i32
    %c0_i32_1 = arith.constant 0 : i32
    return %c0_i32, %c0_i32_0 : i32, i32
  }
  func.func @transform_5(%arg0: i32, %arg1: i32) -> (i32, i32) {
    %c0_i32 = arith.constant 0 : i32
    %c0_i32_0 = arith.constant 0 : i32
    %c0_i32_1 = arith.constant 0 : i32
    return %c0_i32, %c0_i32_0 : i32, i32
  }
  func.func @transform_6(%arg0: i32, %arg1: i32) -> (i32, i32) {
    %c0_i32 = arith.constant 0 : i32
    %c0_i32_0 = arith.constant 0 : i32
    %c0_i32_1 = arith.constant 0 : i32
    return %c0_i32, %c0_i32_0 : i32, i32
  }
  func.func @transform_7(%arg0: i32, %arg1: i32) -> (i32, i32) {
    %c0_i32 = arith.constant 0 : i32
    %c0_i32_0 = arith.constant 0 : i32
    %c0_i32_1 = arith.constant 0 : i32
    return %c0_i32, %c0_i32_0 : i32, i32
  }
  func.func @transform_8(%arg0: i32, %arg1: i32) -> (i32, i32) {
    %c0_i32 = arith.constant 0 : i32
    %c0_i32_0 = arith.constant 0 : i32
    %c0_i32_1 = arith.constant 0 : i32
    return %c0_i32, %c0_i32_0 : i32, i32
  }
  func.func @transform_9(%arg0: i32, %arg1: i32) -> (i32, i32) {
    %c0_i32 = arith.constant 0 : i32
    %c0_i32_0 = arith.constant 0 : i32
    %c0_i32_1 = arith.constant 0 : i32
    return %c0_i32, %c0_i32_0 : i32, i32
  }
  func.func @transform_10(%arg0: i32, %arg1: i32) -> (i32, i32) {
    %c0_i32 = arith.constant 0 : i32
    %c0_i32_0 = arith.constant 0 : i32
    %c0_i32_1 = arith.constant 0 : i32
    return %c0_i32, %c0_i32_0 : i32, i32
  }
  func.func @transform_11(%arg0: i32, %arg1: i32) -> (i32, i32) {
    %c0_i32 = arith.constant 0 : i32
    %c0_i32_0 = arith.constant 0 : i32
    return %arg0, %c0_i32 : i32, i32
  }
}

</mosaic_0001>

<bundles_post_ra>
// kernel: tpu_custom_call.1
= control target key start
LH: loop header
LB: loop body
LE: loop exit
PB: predicated region body
PF: predicated region fallthrough
CT: control target
= control target key end

     0   :  { %s1610_s0 = inlined_call_operand.hbm [shape: f32[2,8,32], index: 0, kind: input, shape index: {}]   ;;  %s1611_s1 = inlined_call_operand.hbm [shape: f32[2,8,32], index: 1, kind: input, shape index: {}]   ;;  %s1612_s2 = inlined_call_operand.vmem [shape: f32[32,512], index: 2, kind: input, shape index: {}]   ;;  %s1613_s3 = inlined_call_operand.vmem [shape: f32[32,512], index: 3, kind: input, shape index: {}]   ;;  %s1614_s4 = inlined_call_operand.vmem [shape: f32[1,512], index: 4, kind: input, shape index: {}]   ;;  %s1615_s5 = inlined_call_operand.hbm [shape: f32[512,128], index: 5, kind: input, shape index: {}]   ;;  %s1616_s6 = inlined_call_operand.vmem [shape: f32[1,128], index: 6, kind: input, shape index: {}]   ;;  %s1617_s7 = inlined_call_operand.vmem [shape: f32[128,64], index: 7, kind: input, shape index: {}]   ;;  %s1618_s8 = inlined_call_operand.vmem [shape: f32[1,64], index: 8, kind: input, shape index: {}]   ;;  %s1619_s9 = inlined_call_operand.vmem [shape: f32[64,1], index: 9, kind: input, shape index: {}]   ;;  %s1620_s10 = inlined_call_operand.<no memory space> [shape: f32[1,1], index: 10, kind: input, shape index: {}]   ;;  %s1621_s11 = inlined_call_operand.vmem [shape: f32[2,1], index: 11, kind: output, shape index: {}]  }
   0x1   :  { %v16_v0 = vstv %s1620_s10 }
   0x2   :  { %17 = vst [vmem:[#allocation4] sm:$0x1] %v16_v0 }
   0x3   :  { %18 = vsyncpa [#allocation6], 0 }
   0x4   :  { %19 = vsyncpa [#allocation8], 0  ;;  %s1271_s19 = smov [#allocation7]   ;;  %s1272_s21 = smov [#allocation5]  }
   0x5   :  { %s37_s20 = sshll.u32 %s1271_s19, 4  ;;  %s25_s22 = sshll.u32 %s1272_s21, 4  ;;  %s38_s20 = int_to_ptr.vmem [resolvable:$true] %s37_s20  ;;  %s1342_s22 = int_to_ptr.vmem [resolvable:$true] %s25_s22 }
   0x6   :  { %s1201_s25 = scalar_lea.hbm %s1611_s1, 256 }
   0x7   :  { %p1202_p0 = scmp.ne.s32.totalorder %s1611_s1, %s1201_s25  ;;  %p1205_p1 = scmp.lt.u32.totalorder %s1201_s25, %s1611_s1 }
   0x9   :  { %p1207_p2 = pnand %p1205_p1, %p1202_p0 }
   0xb   :  { %1210 = shalt.err (!%p1207_p2)
}
   0xc   :  { %s1211_s29 = scalar_lea.vmem %s38_s20, 256  ;;  %p1216_p4 = scmp.lt.s32.totalorder %s38_s20, %s38_s20 }
   0xd   :  { %p1212_p3 = scmp.ne.s32.totalorder %s38_s20, %s1211_s29  ;;  %p1217_p5 = scmp.lt.s32.totalorder %s1211_s29, %s1211_s29 }
   0xf   :  { %p1218_p6 = por %p1217_p5, %p1216_p4 }
  0x11   :  { %p1219_p7 = pnand %p1218_p6, %p1212_p3 }
  0x13   :  { %1222 = shalt.err (!%p1219_p7)
}
  0x14   :  { %s1273_s30 = smov 128   ;;  %s1274_s12 = smov 8  }
  0x15   :  { %43 = dma.hbm_to_vmem [thread:$0]  %s1611_s1, 256, %s38_s20, [#allocation8], %s1273_s30, %s1273_s30, %s1274_s12  }
  0x16   :  { %s1223_s17 = scalar_lea.hbm %s1610_s0, 256 }
  0x17   :  { %p1224_p8 = scmp.ne.s32.totalorder %s1610_s0, %s1223_s17  ;;  %p1227_p9 = scmp.lt.u32.totalorder %s1223_s17, %s1610_s0 }
  0x19   :  { %p1229_p10 = pnand %p1227_p9, %p1224_p8 }
  0x1b   :  { %1232 = shalt.err (!%p1229_p10)
}
  0x1c   :  { %s1233_s24 = scalar_lea.vmem %s1342_s22, 256  ;;  %p1238_p12 = scmp.lt.s32.totalorder %s1342_s22, %s1342_s22 }
  0x1d   :  { %p1234_p11 = scmp.ne.s32.totalorder %s1342_s22, %s1233_s24  ;;  %p1239_p13 = scmp.lt.s32.totalorder %s1233_s24, %s1233_s24 }
  0x1f   :  { %p1240_p0 = por %p1239_p13, %p1238_p12 }
  0x21   :  { %p1241_p1 = pnand %p1240_p0, %p1234_p11 }
  0x23   :  { %1244 = shalt.err (!%p1241_p1)
}
  0x24   :  { %31 = dma.hbm_to_vmem [thread:$0]  %s1610_s0, 256, %s1342_s22, [#allocation6], %s1273_s30, %s1273_s30, %s1274_s12  }
  0x25   :  { %s1275_s25 = smov [#allocation9]   ;;  %s1245_s10 = scalar_lea.hbm %s1615_s5, 8192 }
  0x26   :  { %s55_s26 = sshll.u32 %s1275_s25, 4  ;;  %p1246_p2 = scmp.ne.s32.totalorder %s1615_s5, %s1245_s10  ;;  %s56_s26 = int_to_ptr.vmem [resolvable:$true] %s55_s26 }
  0x27   :  { %p1249_p3 = scmp.lt.u32.totalorder %s1245_s10, %s1615_s5 }
  0x29   :  { %p1251_p4 = pnand %p1249_p3, %p1246_p2 }
  0x2b   :  { %1254 = shalt.err (!%p1251_p4)
}
  0x2c   :  { %s1255_s16 = scalar_lea.vmem %s56_s26, 8192  ;;  %p1260_p6 = scmp.lt.s32.totalorder %s56_s26, %s56_s26 }
  0x2d   :  { %p1256_p5 = scmp.ne.s32.totalorder %s56_s26, %s1255_s16  ;;  %p1261_p7 = scmp.lt.s32.totalorder %s1255_s16, %s1255_s16 }
  0x2f   :  { %p1262_p8 = por %p1261_p7, %p1260_p6 }
  0x31   :  { %p1263_p9 = pnand %p1262_p8, %p1256_p5 }
  0x33   :  { %1266 = shalt.err (!%p1263_p9)
}
  0x34   :  { %61 = dma.hbm_to_vmem [thread:$0]  %s1615_s5, 8192, %s56_s26, [#allocation8], %s1273_s30, %s1273_s30, %s1274_s12  }
  0x35   :  { %1267 = dma.done.wait [#allocation6], 256  }
  0x36   :  { %1268 = vsyncadd [#allocation6], 4294967040 }
  0x37   :  { %1269 = dma.done.wait [#allocation8], 8448  }
  0x38   :  { %1270 = vsyncadd [#allocation8], 4294958848  ;;  %vm85_vm0 = vcmask 254976   ;;  %v1276_v1 = vmov 0.0   ;;  %v161_v2 = vld [vmem:[%s1613_s3 + $0x8] sm:$0xff]  ;;  %v160_v4 = vld [vmem:[%s1613_s3] sm:$0xff] }
  0x39   :  { %86 = vst.msk [vmem:[#allocation2] sm:$0x3] %vm85_vm0, %v1276_v1  ;;  %87 = vst.msk [vmem:[#allocation3] sm:$0x3] %vm85_vm0, %v1276_v1  ;;  %243 = vmatprep.mubr.f32.mxu1 %v1276_v1  ;;  %388 = vmatprep.mubr.f32.mxu0 %v1276_v1  ;;  %v165_v3 = vld [vmem:[%s1613_s3 + $0x28] sm:$0xff]  ;;  %v164_v6 = vld [vmem:[%s1613_s3 + $0x20] sm:$0xff] }
  0x3a   :  { %v1057_v5 = vpack.c.bf16 %v165_v3, %v161_v2  ;;  %v145_v7 = vld [vmem:[%s1612_s2 + $0x8] sm:$0xff]  ;;  %v1059_v9 = vpack.c.bf16 %v164_v6, %v160_v4  ;;  %v144_v11 = vld [vmem:[%s1612_s2] sm:$0xff]  ;;  %vm93_vm1 = vcmask 261120   ;;  %v163_v25 = vld [vmem:[%s1613_s3 + $0x18] sm:$0xff]  ;;  %vm110_vm2 = vcmask 1041409  }
  0x3b   :  { %v149_v8 = vld [vmem:[%s1612_s2 + $0x28] sm:$0xff]  ;;  %v148_v12 = vld [vmem:[%s1612_s2 + $0x20] sm:$0xff]  ;;  %v167_v26 = vld [vmem:[%s1613_s3 + $0x38] sm:$0xff]  ;;  %vm1278_vm3 = vmmov 0   ;;  %vm817_vm4 = vcmask 523264   ;;  %vm891_vm5 = vcmask 1024  }
  0x3c   :  { %v1073_v10 = vpack.c.bf16 %v149_v8, %v145_v7  ;;  %v169_v13 = vld [vmem:[%s1613_s3 + $0x48] sm:$0xff]  ;;  %1058 = vmatprep.subr.bf16.mxu1 %v1057_v5  ;;  %v1075_v14 = vpack.c.bf16 %v148_v12, %v144_v11  ;;  %v168_v16 = vld [vmem:[%s1613_s3 + $0x40] sm:$0xff]  ;;  %v1065_v28 = vpack.c.bf16 %v167_v26, %v163_v25  ;;  %v90_v31 = vld [vmem:[#allocation7] sm:$0xff] }
  0x3d   :  { %v173_v15 = vld [vmem:[%s1613_s3 + $0x68] sm:$0xff]  ;;  %v172_v17 = vld [vmem:[%s1613_s3 + $0x60] sm:$0xff]  ;;  %1060 = vmatpush1.bf16.msra.mxu1 %v1059_v9  ;;  %v117_v35 = vsel %vm93_vm1, %v90_v31, 0.0  ;;  %v162_v9 = vld [vmem:[%s1613_s3 + $0x10] sm:$0xff] }
  0x3e   :  { %1074 = vmatprep.subr.bf16.mxu0 %v1073_v10  ;;  %v1061_v18 = vpack.c.bf16 %v173_v15, %v169_v13  ;;  %v1063_v19 = vpack.c.bf16 %v172_v17, %v168_v16  ;;  %v153_v20 = vld [vmem:[%s1612_s2 + $0x48] sm:$0xff]  ;;  %v152_v22 = vld [vmem:[%s1612_s2 + $0x40] sm:$0xff]  ;;  %v118_v38 = vrot.slane %v117_v35, 4  ;;  %v166_v10 = vld [vmem:[%s1613_s3 + $0x30] sm:$0xff] }
  0x3f   :  { %v157_v21 = vld [vmem:[%s1612_s2 + $0x68] sm:$0xff]  ;;  %1076 = vmatpush1.bf16.msra.mxu0 %v1075_v14  ;;  %v156_v24 = vld [vmem:[%s1612_s2 + $0x60] sm:$0xff]  ;;  %v171_v11 = vld [vmem:[%s1613_s3 + $0x58] sm:$0xff] }
  0x40   :  { %v1077_v23 = vpack.c.bf16 %v157_v21, %v153_v20  ;;  %1062 = vmatprep.subr.bf16.mxu1 %v1061_v18  ;;  %v1079_v27 = vpack.c.bf16 %v156_v24, %v152_v22  ;;  %v88_v29 = vld [vmem:[#allocation5] sm:$0xff]  ;;  %v89_v30 = vld [vmem:[#allocation5 + $0x8] sm:$0xff]  ;;  %v91_v32 = vld [vmem:[#allocation7 + $0x8] sm:$0xff]  ;;  %v119_v43 = vadd.f32 %v118_v38, %v117_v35 }
  0x41   :  { %v94_v33 = vsel %vm93_vm1, %v88_v29, 0.0  ;;  %v101_v34 = vsel %vm93_vm1, %v89_v30, 0.0  ;;  %1064 = vmatpush1.bf16.msra.mxu1 %v1063_v19  ;;  %v124_v39 = vsel %vm93_vm1, %v91_v32, 0.0  ;;  %v512_v49 = vld [vmem:[#allocation9 + $0x80] sm:$0xff]  ;;  %v513_v53 = vld [vmem:[#allocation9 + $0x88] sm:$0xff]  ;;  %v175_v12 = vld [vmem:[%s1613_s3 + $0x78] sm:$0xff]  ;;  %v1067_v19 = vpack.c.bf16 %v166_v10, %v162_v9 }
  0x42   :  { %1078 = vmatprep.subr.bf16.mxu0 %v1077_v23  ;;  %v95_v36 = vrot.slane %v94_v33, 4  ;;  %v102_v37 = vrot.slane %v101_v34, 4  ;;  %1066 = vmatprep.subr.bf16.mxu1 %v1065_v28  ;;  %v125_v40 = vrot.slane %v124_v39, 4  ;;  %v120_v47 = vrot.slane %v119_v43, 2  ;;  %v92_v60 = vld [vmem:[#allocation2] sm:$0x3] }
  0x43   :  { %1080 = vmatpush1.bf16.msra.mxu0 %v1079_v27  ;;  %v1089_v55 = vpack.c.bf16 %v513_v53, %v512_v49  ;;  %v116_v0 = vld [vmem:[#allocation3] sm:$0x3]  ;;  %v496_v7 = vld [vmem:[#allocation9] sm:$0xff]  ;;  %v497_v8 = vld [vmem:[#allocation9 + $0x8] sm:$0xff]  ;;  %v1069_v24 = vpack.c.bf16 %v175_v12, %v171_v11 }
  0x44   :  { %v96_v41 = vadd.f32 %v95_v36, %v94_v33  ;;  %v103_v42 = vadd.f32 %v102_v37, %v101_v34  ;;  %v126_v44 = vadd.f32 %v125_v40, %v124_v39  ;;  %v121_v52 = vadd.f32 %v120_v47, %v119_v43  ;;  %v514_v13 = vld [vmem:[#allocation9 + $0x90] sm:$0xff]  ;;  %v515_v14 = vld [vmem:[#allocation9 + $0x98] sm:$0xff]  ;;  %v516_v27 = vld [vmem:[#allocation9 + $0xa0] sm:$0xff] }
  0x45   :  { %1090 = vmatprep.subr.bf16.mxu0 %v1089_v55  ;;  %v170_v16 = vld [vmem:[%s1613_s3 + $0x50] sm:$0xff]  ;;  %v1091_v17 = vpack.c.bf16 %v497_v8, %v496_v7  ;;  %v499_v22 = vld [vmem:[#allocation9 + $0x18] sm:$0xff]  ;;  %v1093_v26 = vpack.c.bf16 %v515_v14, %v514_v13  ;;  %v500_v34 = vld [vmem:[#allocation9 + $0x20] sm:$0xff] }
  0x46   :  { %v97_v45 = vrot.slane %v96_v41, 2  ;;  %v104_v46 = vrot.slane %v103_v42, 2  ;;  %v127_v48 = vrot.slane %v126_v44, 2  ;;  %v122_v58 = vrot.slane %v121_v52, 1  ;;  %v498_v21 = vld [vmem:[#allocation9 + $0x10] sm:$0xff]  ;;  %v517_v28 = vld [vmem:[#allocation9 + $0xa8] sm:$0xff] }
  0x47   :  { %v174_v25 = vld [vmem:[%s1613_s3 + $0x70] sm:$0xff]  ;;  %v147_v29 = vld [vmem:[%s1612_s2 + $0x18] sm:$0xff]  ;;  %v1095_v31 = vpack.c.bf16 %v499_v22, %v498_v21  ;;  %v1097_v33 = vpack.c.bf16 %v517_v28, %v516_v27  ;;  %v544_v53 = vld [vmem:[#allocation9 + $0x180] sm:$0xff] }
  0x48   :  { %v98_v50 = vadd.f32 %v97_v45, %v96_v41  ;;  %v105_v51 = vadd.f32 %v104_v46, %v103_v42  ;;  %v128_v54 = vadd.f32 %v127_v48, %v126_v44  ;;  %v123_v63 = vadd.f32 %v122_v58, %v121_v52  ;;  %v151_v30 = vld [vmem:[%s1612_s2 + $0x38] sm:$0xff]  ;;  %v501_v35 = vld [vmem:[#allocation9 + $0x28] sm:$0xff]  ;;  %v548_v12 = vld [vmem:[#allocation9 + $0x1a0] sm:$0xff] }
  0x49   :  { %v1071_v32 = vpack.c.bf16 %v174_v25, %v170_v16  ;;  %v1081_v36 = vpack.c.bf16 %v151_v30, %v147_v29  ;;  %v146_v37 = vld [vmem:[%s1612_s2 + $0x10] sm:$0xff]  ;;  %v155_v39 = vld [vmem:[%s1612_s2 + $0x58] sm:$0xff]  ;;  %v1099_v43 = vpack.c.bf16 %v501_v35, %v500_v34  ;;  %v524_v21 = vld [vmem:[#allocation9 + $0xe0] sm:$0xff] }
  0x4a   :  { %v99_v56 = vrot.slane %v98_v50, 1  ;;  %v106_v57 = vrot.slane %v105_v51, 1  ;;  %v129_v59 = vrot.slane %v128_v54, 1  ;;  %v150_v38 = vld [vmem:[%s1612_s2 + $0x30] sm:$0xff]  ;;  %v159_v40 = vld [vmem:[%s1612_s2 + $0x78] sm:$0xff] }
  0x4b   :  { %v518_v41 = vld [vmem:[#allocation9 + $0xb0] sm:$0xff]  ;;  %v519_v42 = vld [vmem:[#allocation9 + $0xb8] sm:$0xff]  ;;  %v1083_v44 = vpack.c.bf16 %v150_v38, %v146_v37  ;;  %v1085_v48 = vpack.c.bf16 %v159_v40, %v155_v39  ;;  %v521_v52 = vld [vmem:[#allocation9 + $0xc8] sm:$0xff] }
  0x4c   :  { %v100_v61 = vadd.f32 %v99_v56, %v98_v50  ;;  %v107_v62 = vadd.f32 %v106_v57, %v105_v51  ;;  %v130_v2 = vadd.f32 %v129_v59, %v128_v54  ;;  %v154_v45 = vld [vmem:[%s1612_s2 + $0x50] sm:$0xff]  ;;  %v503_v47 = vld [vmem:[#allocation9 + $0x38] sm:$0xff]  ;;  %v1101_v50 = vpack.c.bf16 %v519_v42, %v518_v41  ;;  %v520_v51 = vld [vmem:[#allocation9 + $0xc0] sm:$0xff] }
  0x4d   :  { %v502_v46 = vld [vmem:[#allocation9 + $0x30] sm:$0xff]  ;;  %v545_v54 = vld [vmem:[#allocation9 + $0x188] sm:$0xff]  ;;  %v528_v57 = vld [vmem:[#allocation9 + $0x100] sm:$0xff]  ;;  %v1105_v58 = vpack.c.bf16 %v521_v52, %v520_v51 }
  0x4e   :  { %v111_v3 = vsel %vm110_vm2, %v107_v62, %v100_v61  ;;  %v133_v5 = vsel %vm110_vm2, %v130_v2, %v123_v63  ;;  %v158_v49 = vld [vmem:[%s1612_s2 + $0x70] sm:$0xff]  ;;  %v1103_v55 = vpack.c.bf16 %v503_v47, %v502_v46  ;;  %v504_v59 = vld [vmem:[#allocation9 + $0x40] sm:$0xff]  ;;  %v1121_v61 = vpack.c.bf16 %v545_v54, %v544_v53  ;;  %v507_v8 = vld [vmem:[#allocation9 + $0x58] sm:$0xff] }
  0x4f   :  { %v113_v4 = vadd.f32 %v111_v3, %v92_v60  ;;  %v135_v6 = vadd.f32 %v133_v5, %v116_v0  ;;  %v1087_v56 = vpack.c.bf16 %v158_v49, %v154_v45  ;;  %v505_v60 = vld [vmem:[#allocation9 + $0x48] sm:$0xff]  ;;  %v522_v63 = vld [vmem:[#allocation9 + $0xd0] sm:$0xff]  ;;  %v523_v0 = vld [vmem:[#allocation9 + $0xd8] sm:$0xff] }
  0x50   :  { %v529_v62 = vld [vmem:[#allocation9 + $0x108] sm:$0xff]  ;;  %v546_v2 = vld [vmem:[#allocation9 + $0x190] sm:$0xff]  ;;  %v547_v3 = vld [vmem:[#allocation9 + $0x198] sm:$0xff] }
  0x51   :  { %115 = vst.msk [vmem:[#allocation2] sm:$0x3] %vm85_vm0, %v113_v4  ;;  %136 = vst.msk [vmem:[#allocation3] sm:$0x3] %vm85_vm0, %v135_v6  ;;  %v1107_v4 = vpack.c.bf16 %v505_v60, %v504_v59  ;;  %v1123_v5 = vpack.c.bf16 %v529_v62, %v528_v57  ;;  %v1109_v6 = vpack.c.bf16 %v523_v0, %v522_v63  ;;  %v506_v7 = vld [vmem:[#allocation9 + $0x50] sm:$0xff]  ;;  %v531_v11 = vld [vmem:[#allocation9 + $0x118] sm:$0xff]  ;;  %v468_v63 = vlaneseq }
  0x52   :  { %v1125_v9 = vpack.c.bf16 %v547_v3, %v546_v2  ;;  %v530_v10 = vld [vmem:[#allocation9 + $0x110] sm:$0xff]  ;;  %v549_v13 = vld [vmem:[#allocation9 + $0x1a8] sm:$0xff]  ;;  %v1111_v14 = vpack.c.bf16 %v507_v8, %v506_v7  ;;  %v551_v27 = vld [vmem:[#allocation9 + $0x1b8] sm:$0xff]  ;;  %v1277_v62 = vmov 0.0|0.0  }
  0x53   :  { %v1129_v16 = vpack.c.bf16 %v549_v13, %v548_v12  ;;  %v525_v22 = vld [vmem:[#allocation9 + $0xe8] sm:$0xff]  ;;  %v534_v28 = vld [vmem:[#allocation9 + $0x130] sm:$0xff]  ;;  %v535_v30 = vld [vmem:[#allocation9 + $0x138] sm:$0xff]  ;;  %v469_v0 = vshrl.u32 %v468_v63, 7 }
  0x54   :  { %v509_v25 = vld [vmem:[#allocation9 + $0x68] sm:$0xff]  ;;  %v510_v35 = vld [vmem:[#allocation9 + $0x70] sm:$0xff]  ;;  %v552_v37 = vld [vmem:[#allocation9 + $0x1c0] sm:$0xff] }
  0x55   :  { %v553_v39 = vld [vmem:[#allocation9 + $0x1c8] sm:$0xff]  ;;  %v536_v40 = vld [vmem:[#allocation9 + $0x140] sm:$0xff]  ;;  %v555_v45 = vld [vmem:[#allocation9 + $0x1d8] sm:$0xff]  ;;  %v470_v2 = vsub.s32 0, %v469_v0 }
  0x56   :  { %v537_v41 = vld [vmem:[#allocation9 + $0x148] sm:$0xff]  ;;  %v1137_v42 = vpack.c.bf16 %v553_v39, %v552_v37  ;;  %v538_v47 = vld [vmem:[#allocation9 + $0x150] sm:$0xff]  ;;  %v556_v49 = vld [vmem:[#allocation9 + $0x1e0] sm:$0xff] }
  0x57   :  { %v557_v51 = vld [vmem:[#allocation9 + $0x1e8] sm:$0xff]  ;;  %v540_v53 = vld [vmem:[#allocation9 + $0x160] sm:$0xff]  ;;  %v559_v57 = vld [vmem:[#allocation9 + $0x1f8] sm:$0xff] }
  0x58   :  { %v140_v15 = vld [vmem:[#allocation2] sm:$0x3]  ;;  %v142_v18 = vld [vmem:[#allocation3] sm:$0x3]  ;;  %v1145_v52 = vpack.c.bf16 %v557_v51, %v556_v49  ;;  %v541_v54 = vld [vmem:[#allocation9 + $0x168] sm:$0xff] }
  0x59   :  { %v1475_v20 = vmul.f32 0.125, %v140_v15  ;;  %v143_v23 = vmul.f32 0.125, %v142_v18  ;;  %v1127_v15 = vpack.c.bf16 %v531_v11, %v530_v10  ;;  %v533_v18 = vld [vmem:[#allocation9 + $0x128] sm:$0xff]  ;;  %v542_v59 = vld [vmem:[#allocation9 + $0x170] sm:$0xff]  ;;  %v543_v60 = vld [vmem:[#allocation9 + $0x178] sm:$0xff] }
  0x5a   :  { %v466_v3 = vld [vmem:[%s1614_s4] sm:$0xf]  ;;  %v715_v37 = vld [vmem:[%s1617_s7 + $0x38] sm:$0xff] }
  0x5b   :  { %901 = vmatmul.mubr.msk.f32.vlgmr.msra.gmra.mrb[0].mxu0 %vm93_vm1, %v1475_v20  ;;  %899 = vmatmul.mubr.msk.f32.vlgmr.msra.gmra.mrb[0].mxu1 %vm93_vm1, %v143_v23  ;;  %v716_v39 = vld [vmem:[%s1617_s7 + $0x40] sm:$0xff]  ;;  %v723_v49 = vld [vmem:[%s1617_s7 + $0x78] sm:$0xff] }
  0x5c   :  { %1092 = vmatpush3.bf16.msra.mxu0 %v1091_v17  ;;  %1068 = vmatpush1.bf16.msra.mxu1 %v1067_v19  ;;  %v532_v17 = vld [vmem:[#allocation9 + $0x120] sm:$0xff]  ;;  %v903_v63 = vld [vmem:[%s1616_s6] ss:$0 sm:$0xff] }
  0x5d   :  { %314 = vmatprep.mubr.f32.mxu1 %v1276_v1  ;;  %1070 = vmatprep.subr.bf16.mxu1 %v1069_v24  ;;  %v1131_v19 = vpack.c.bf16 %v533_v18, %v532_v17  ;;  %v508_v24 = vld [vmem:[#allocation9 + $0x60] sm:$0xff] }
  0x5e   :  { %1094 = vmatprep.subr.bf16.mxu0 %v1093_v26  ;;  %v1115_v26 = vpack.c.bf16 %v509_v25, %v508_v24  ;;  %v482_v24 = vsub.s32 3, %v469_v0  ;;  %v802_v51 = vld [vmem:[%s1619_s9] sm:$0xff] }
  0x60   :  { %1096 = vmatpush3.bf16.msra.mxu0 %v1095_v31  ;;  %1072 = vmatpush1.bf16.msra.mxu1 %v1071_v32  ;;  %v1135_v31 = vpack.c.bf16 %v535_v30, %v534_v28  ;;  %v526_v32 = vld [vmem:[#allocation9 + $0xf0] sm:$0xff]  ;;  %v483_v28 = vrot.slane %v466_v3, %v482_v24 }
  0x61   :  { %1098 = vmatprep.subr.bf16.mxu0 %v1097_v33  ;;  %1082 = vmatprep.subr.bf16.mxu1 %v1081_v36  ;;  %v527_v33 = vld [vmem:[#allocation9 + $0xf8] sm:$0xff] }
  0x62   :  { %v1117_v34 = vpack.c.bf16 %v527_v33, %v526_v32  ;;  %v511_v36 = vld [vmem:[#allocation9 + $0x78] sm:$0xff] }
  0x63   :  { %900 = vmatmul.mubr.msk.f32.vlgmr.msra.gmra.mrb[2].mxu1 %vm93_vm1, %v143_v23  ;;  %v1113_v23 = vpack.c.bf16 %v525_v22, %v524_v21  ;;  %v1119_v38 = vpack.c.bf16 %v511_v36, %v510_v35  ;;  %v710_v21 = vld [vmem:[%s1617_s7 + $0x10] sm:$0xff]  ;;  %v711_v22 = vld [vmem:[%s1617_s7 + $0x18] sm:$0xff] }
  0x64   :  { %1100 = vmatpush3.bf16.msra.mxu0 %v1099_v43  ;;  %1084 = vmatpush1.bf16.msra.mxu1 %v1083_v44  ;;  %v1139_v43 = vpack.c.bf16 %v537_v41, %v536_v40  ;;  %v554_v44 = vld [vmem:[#allocation9 + $0x1d0] sm:$0xff]  ;;  %v1157_v25 = vpack.c.bf16 %v711_v22, %v710_v21  ;;  %v717_v40 = vld [vmem:[%s1617_s7 + $0x48] sm:$0xff] }
  0x65   :  { %459 = vmatprep.mubr.f32.mxu1 %v1276_v1  ;;  %1086 = vmatprep.subr.bf16.mxu1 %v1085_v48  ;;  %v1141_v46 = vpack.c.bf16 %v555_v45, %v554_v44  ;;  %v539_v48 = vld [vmem:[#allocation9 + $0x158] sm:$0xff]  ;;  %v714_v36 = vld [vmem:[%s1617_s7 + $0x30] sm:$0xff] }
  0x66   :  { %1102 = vmatprep.subr.bf16.mxu0 %v1101_v50  ;;  %v1143_v50 = vpack.c.bf16 %v539_v48, %v538_v47  ;;  %v718_v41 = vld [vmem:[%s1617_s7 + $0x50] sm:$0xff]  ;;  %v720_v45 = vld [vmem:[%s1617_s7 + $0x60] sm:$0xff] }
  0x67   :  { %v722_v48 = vld [vmem:[%s1617_s7 + $0x70] sm:$0xff] }
  0x68   :  { %1104 = vmatpush3.bf16.msra.mxu0 %v1103_v55  ;;  %1088 = vmatpush1.bf16.msra.mxu1 %v1087_v56  ;;  %v1147_v55 = vpack.c.bf16 %v541_v54, %v540_v53  ;;  %v558_v56 = vld [vmem:[#allocation9 + $0x1f0] sm:$0xff] }
  0x69   :  { %1106 = vmatprep.subr.bf16.mxu0 %v1105_v58  ;;  %1122 = vmatprep.subr.bf16.mxu1 %v1121_v61  ;;  %v1149_v58 = vpack.c.bf16 %v559_v57, %v558_v56  ;;  %v1151_v61 = vpack.c.bf16 %v543_v60, %v542_v59  ;;  %v804_v53 = vld [vmem:[%s1619_s9 + $0x10] sm:$0xff]  ;;  %v807_v57 = vld [vmem:[%s1619_s9 + $0x28] sm:$0xff] }
  0x6b   :  { %902 = vmatmul.mubr.msk.f32.vlgmr.msra.gmra.mrb[2].mxu1 %vm93_vm1, %v1475_v20  ;;  %v550_v20 = vld [vmem:[#allocation9 + $0x1b0] sm:$0xff] }
  0x6c   :  { %1108 = vmatpush3.bf16.msra.mxu0 %v1107_v4  ;;  %1124 = vmatpush3.bf16.msra.mxu1 %v1123_v5  ;;  %v1133_v29 = vpack.c.bf16 %v551_v27, %v550_v20  ;;  %v474_v4 = vsub.s32 1, %v469_v0  ;;  %v712_v20 = vld [vmem:[%s1617_s7 + $0x20] sm:$0xff] }
  0x6d   :  { %1110 = vmatprep.subr.bf16.mxu0 %v1109_v6  ;;  %1126 = vmatprep.subr.bf16.mxu1 %v1125_v9  ;;  %v471_v6 = vrot.slane %v466_v3, %v470_v2 }
  0x6e   :  { %v475_v9 = vrot.slane %v466_v3, %v474_v4 }
  0x70   :  { %1112 = vmatpush3.bf16.msra.mxu0 %v1111_v14  ;;  %1128 = vmatpush3.bf16.msra.mxu1 %v1127_v15  ;;  %v708_v14 = vld [vmem:[%s1617_s7] sm:$0xff]  ;;  %v709_v15 = vld [vmem:[%s1617_s7 + $0x8] sm:$0xff] }
  0x71   :  { %1130 = vmatprep.subr.bf16.mxu1 %v1129_v16  ;;  %1114 = vmatprep.subr.bf16.mxu0 %v1113_v23  ;;  %v1154_v18 = vpack.c.bf16 %v709_v15, %v708_v14  ;;  %v478_v23 = vsub.s32 2, %v469_v0  ;;  %v905_v14 = vld [vmem:[#allocation4] ss:$0 sm:$0xff] }
  0x73   :  { %v479_v27 = vrot.slane %v466_v3, %v478_v23 }
  0x74   :  { %1132 = vmatpush3.bf16.msra.mxu1 %v1131_v19  ;;  %1116 = vmatpush3.bf16.msra.mxu0 %v1115_v26  ;;  %v713_v26 = vld [vmem:[%s1617_s7 + $0x28] sm:$0xff] }
  0x75   :  { %1134 = vmatprep.subr.bf16.mxu1 %v1133_v29  ;;  %1118 = vmatprep.subr.bf16.mxu0 %v1117_v34  ;;  %v1160_v29 = vpack.c.bf16 %v713_v26, %v712_v20 }
  0x78   :  { %1136 = vmatpush3.bf16.msra.mxu1 %v1135_v31  ;;  %1120 = vmatpush3.bf16.msra.mxu0 %v1119_v38  ;;  %v1163_v38 = vpack.c.bf16 %v715_v37, %v714_v36 }
  0x79   :  { %1138 = vmatprep.subr.bf16.mxu1 %v1137_v42  ;;  %1153 = vmatprep.subr.bf16.mxu0 %v1277_v62  ;;  %v1166_v42 = vpack.c.bf16 %v717_v40, %v716_v39 }
  0x7c   :  { %1140 = vmatpush3.bf16.msra.mxu1 %v1139_v43  ;;  %v719_v43 = vld [vmem:[%s1617_s7 + $0x58] sm:$0xff] }
  0x7d   :  { %1142 = vmatprep.subr.bf16.mxu1 %v1141_v46  ;;  %v1169_v44 = vpack.c.bf16 %v719_v43, %v718_v41  ;;  %v721_v46 = vld [vmem:[%s1617_s7 + $0x68] sm:$0xff] }
  0x7e   :  { %v1172_v47 = vpack.c.bf16 %v721_v46, %v720_v45 }
  0x80   :  { %1144 = vmatpush3.bf16.msra.mxu1 %v1143_v50  ;;  %v1175_v50 = vpack.c.bf16 %v723_v49, %v722_v48 }
  0x81   :  { %1146 = vmatprep.subr.bf16.mxu1 %v1145_v52  ;;  %v803_v52 = vld [vmem:[%s1619_s9 + $0x8] sm:$0xff] }
  0x82   :  { %v1178_v54 = vpack.c.bf16 %v803_v52, %v802_v51 }
  0x84   :  { %1148 = vmatpush3.bf16.msra.mxu1 %v1147_v55  ;;  %v805_v55 = vld [vmem:[%s1619_s9 + $0x18] sm:$0xff] }
  0x85   :  { %1150 = vmatprep.subr.bf16.mxu1 %v1149_v58  ;;  %v1181_v56 = vpack.c.bf16 %v805_v55, %v804_v53 }
  0x88   :  { %1152 = vmatpush3.bf16.msra.mxu1 %v1151_v61 }
  0x89   :  { %1177 = vmatprep.subr.bf16.mxu1 %v1277_v62 }
 0x12e   :  { %v390_v5 = vpop.f32.mrb[0].mxu0  ;;  %v245_v7 = vpop.f32.mrb[0].mxu1 }
 0x12f   :  { %v392_v8 = vpop.f32.mrb[1].mxu0  ;;  %v391_v10 = vadd.f32 %v390_v5, %v245_v7  ;;  %v247_v11 = vpop.f32.mrb[1].mxu1  ;;  %v808_v7 = vld [vmem:[%s1619_s9 + $0x30] sm:$0xff] }
 0x130   :  { %v393_v12 = vadd.f32 %v392_v8, %v247_v11 }
 0x131   :  { %v488_v13 = vadd.f32 %v471_v6, %v391_v10 }
 0x132   :  { %v489_v16 = vadd.f32 %v475_v9, %v393_v12  ;;  %v904_v9 = vld [vmem:[%s1618_s8] ss:$0 sm:$0xff] }
 0x133   :  { %v492_v19 = vmax.f32 %v488_v13, 0.0 }
 0x134   :  { %v493_v17 = vmax.f32 %v489_v16, 0.0 }
 0x136   :  { %631 = vmatprep.mubr.f32.mxu0 %v493_v17 }
 0x137   :  { %632 = vmatmul.mubr.f32.vlgmr.msra.gmra.mrb[2].mxu0 %v492_v19 }
 0x138   :  { %1155 = vmatpush3.bf16.msra.mxu0 %v1154_v18  ;;  %1035 = vmatprep.mubr.msk.f32.mxu0 %vm1278_vm3, %v1276_v1 }
 0x139   :  { %1156 = vmatprep.subr.bf16.mxu0 %v1277_v62 }
 0x13c   :  { %1158 = vmatpush3.bf16.msra.mxu0 %v1157_v25 }
 0x13d   :  { %1159 = vmatprep.subr.bf16.mxu0 %v1277_v62 }
 0x13e   :  { %v461_v30 = vpop.f32.mrb[2].mxu1 }
 0x13f   :  { %v490_v31 = vadd.f32 %v479_v27, %v461_v30  ;;  %v463_v32 = vpop.f32.mrb[3].mxu1 }
 0x140   :  { %v491_v33 = vadd.f32 %v483_v28, %v463_v32  ;;  %1161 = vmatpush3.bf16.msra.mxu0 %v1160_v29 }
 0x141   :  { %1162 = vmatprep.subr.bf16.mxu0 %v1277_v62  ;;  %v494_v35 = vmax.f32 %v490_v31, 0.0 }
 0x142   :  { %v495_v34 = vmax.f32 %v491_v33, 0.0 }
 0x144   :  { %701 = vmatprep.mubr.f32.mxu1 %v495_v34  ;;  %1164 = vmatpush3.bf16.msra.mxu0 %v1163_v38 }
 0x145   :  { %702 = vmatmul.mubr.f32.vlgmr.msra.gmra.mrb[4].mxu1 %v494_v35  ;;  %1165 = vmatprep.subr.bf16.mxu0 %v1277_v62 }
 0x146   :  { %1054 = vmatprep.mubr.msk.f32.mxu1 %vm1278_vm3, %v1276_v1  ;;  %1179 = vmatpush3.bf16.msra.mxu1 %v1178_v54  ;;  %v806_v1 = vld [vmem:[%s1619_s9 + $0x20] sm:$0xff] }
 0x147   :  { %1180 = vmatprep.subr.bf16.mxu1 %v1277_v62  ;;  %v1184_v58 = vpack.c.bf16 %v807_v57, %v806_v1 }
 0x148   :  { %1167 = vmatpush3.bf16.msra.mxu0 %v1166_v42 }
 0x149   :  { %1168 = vmatprep.subr.bf16.mxu0 %v1277_v62 }
 0x14a   :  { %1182 = vmatpush3.bf16.msra.mxu1 %v1181_v56 }
 0x14b   :  { %1183 = vmatprep.subr.bf16.mxu1 %v1277_v62 }
 0x14c   :  { %1170 = vmatpush3.bf16.msra.mxu0 %v1169_v44 }
 0x14d   :  { %1171 = vmatprep.subr.bf16.mxu0 %v1277_v62 }
 0x14e   :  { %1185 = vmatpush3.bf16.msra.mxu1 %v1184_v58 }
 0x14f   :  { %1186 = vmatprep.subr.bf16.mxu1 %v1277_v62 }
 0x150   :  { %1173 = vmatpush3.bf16.msra.mxu0 %v1172_v47 }
 0x151   :  { %1174 = vmatprep.subr.bf16.mxu0 %v1277_v62  ;;  %v809_v62 = vld [vmem:[%s1619_s9 + $0x38] sm:$0xff] }
 0x152   :  { %v1187_v8 = vpack.c.bf16 %v809_v62, %v808_v7 }
 0x154   :  { %1176 = vmatpush3.bf16.msra.mxu0 %v1175_v50  ;;  %1188 = vmatpush3.bf16.msra.mxu1 %v1187_v8 }
 0x20a   :  { %v939_v59 = vpop.f32.mrb[2].mxu0 }
 0x20b   :  { %v940_v60 = vpop.f32.mrb[3].mxu0 }
 0x20c   :  { %v941_v61 = vadd.f32 %v940_v60, %v939_v59 }
 0x20e   :  { %v634_v3 = vadd.f32 %v941_v61, %v903_v63 }
 0x218   :  { %v974_v0 = vpop.f32.mrb[4].mxu1 }
 0x219   :  { %v975_v2 = vpop.f32.mrb[5].mxu1 }
 0x21a   :  { %v976_v4 = vadd.f32 %v975_v2, %v974_v0 }
 0x21c   :  { %v704_v5 = vadd.f32 %v976_v4, %v634_v3 }
 0x21e   :  { %v707_v6 = vmax.f32 %v704_v5, 0.0 }
 0x220   :  { %1036 = vmatmul.mubr.f32.vlgmr.msra.gmra.mrb[4].mxu0 %v707_v6 }
 0x2f3   :  { %v797_v10 = vpop.f32.mrb[4].mxu0 }
 0x2f4   :  { %v798_v11 = vadd.f32 %v904_v9, %v797_v10  ;;  %v1037_v12 = vpop.f32.mrb[5].mxu0 }
 0x2f6   :  { %v801_v13 = vmax.f32 %v798_v11, 0.0 }
 0x2f8   :  { %1055 = vmatmul.mubr.msk.f32.vlgmr.msra.gmra.mrb[6].mxu1 %vm817_vm4, %v801_v13 }
 0x3cb   :  { %v887_v15 = vpop.f32.mrb[6].mxu1 }
 0x3cc   :  { %v888_v16 = vadd.f32 %v905_v14, %v887_v15  ;;  %v1056_v17 = vpop.f32.mrb[7].mxu1 }
 0x3ce   :  { %892 = vst.msk [vmem:[%s1621_s11] sm:$0x3] %vm891_vm5, %v888_v16 }
 0x3cf   :  { %897 = vsyncpa [#allocation6], 1 }
 0x3d0   :  { %898 = vsyncpa [#allocation8], 1 }

</bundles_post_ra>
